<compile_context>
chip_gen: v7x
topology: tpu7x:2x2x1
jax: 0.10.0
libtpu: 0.0.40
codegen_flags: <defaults>
</compile_context>

<pallas_src>
import math

import jax
import jax.numpy as jnp
from jax import lax
from jax.experimental import pallas as pl
from jax.experimental.pallas import tpu as pltpu

DECAY = 0.25
THRESH = 0.5
ALPHA = 0.5  # only used by the surrogate gradient in the (untranslated) backward

LANE = 128
SUBLANE = 8


def _lif_kernel(x_ref, out_ref, mem_ref):
    # x_ref / out_ref: (T, TM, LANE) VMEM blocks; mem_ref: (TM, LANE) f32 scratch.
    mem0 = x_ref[0].astype(jnp.float32)
    mem_ref[...] = mem0
    out_ref[0] = (mem0 >= THRESH).astype(out_ref.dtype)

    def body(t, carry):
        m_prev = mem_ref[...]
        # spike_{t-1} == (m_prev >= THRESH); m_prev*DECAY*(1-spike) == where(...)
        m = jnp.where(m_prev >= THRESH, 0.0, m_prev * DECAY) + x_ref[t].astype(
            jnp.float32
        )
        mem_ref[...] = m
        out_ref[t] = (m >= THRESH).astype(out_ref.dtype)
        return carry

    lax.fori_loop(1, x_ref.shape[0], body, 0)


def _choose_tm(T, m, budget_bytes=10 * 1024 * 1024):
    """Pick the feature-tile height (rows of 128 lanes) for the (T, TM, 128) block."""
    if m <= SUBLANE:
        return m  # block equals the full dim (allowed even if not a multiple of 8)
    # Resident VMEM per row of TM: 2 double-buffered input blocks + 2 output
    # blocks (each T*128*4 bytes) + the mem scratch row (128*4 bytes).
    per_tm = 4 * T * LANE * 4 + LANE * 4
    tm = budget_bytes // per_tm
    # Keep at least 2 feature tiles so v7x's two TensorCores both get work.
    tm = min(tm, max(SUBLANE, m // 2))
    tm = max(SUBLANE, (tm // SUBLANE) * SUBLANE)
    return min(tm, m)


def mem_update_pallas(x):
    """x: [T, B, C, H, W] float -> spikes of same shape/dtype (values in {0,1})."""
    T = x.shape[0]
    rest = x.shape[1:]
    n = math.prod(rest)

    # Flatten features; pad only when n is not a multiple of 8*128 (rare), so
    # the aligned case avoids extra whole-tensor HBM pad/slice round trips.
    x2 = x.reshape(T, n)
    pad = (-n) % (SUBLANE * LANE)
    if pad:
        x2 = jnp.pad(x2, ((0, 0), (0, pad)))
    m = (n + pad) // LANE
    x3 = x2.reshape(T, m, LANE)

    tm = _choose_tm(T, m)
    grid = (pl.cdiv(m, tm),)

    out3 = pl.pallas_call(
        _lif_kernel,
        out_shape=jax.ShapeDtypeStruct((T, m, LANE), x.dtype),
        grid_spec=pltpu.PrefetchScalarGridSpec(
            num_scalar_prefetch=0,
            grid=grid,
            in_specs=[pl.BlockSpec((T, tm, LANE), lambda nb: (0, nb, 0))],
            out_specs=pl.BlockSpec((T, tm, LANE), lambda nb: (0, nb, 0)),
            scratch_shapes=[pltpu.VMEM((tm, LANE), jnp.float32)],  # mem carry
        ),
        compiler_params=pltpu.CompilerParams(
            dimension_semantics=("parallel",)
        ),
    )(x3)

    out2 = out3.reshape(T, m * LANE)
    if pad:
        out2 = out2[:, :n]
    return out2.reshape((T,) + rest)


def mem_update_ref(x):
    """Pure-JAX reference mirroring the PyTorch loop op-for-op."""
    T = x.shape[0]
    mem = jnp.zeros_like(x[0])
    spike = jnp.zeros_like(x[0])
    outs = []
    for i in range(T):
        if i >= 1:
            mem = mem * DECAY * (1.0 - spike) + x[i]
        else:
            mem = x[i]
        spike = (mem >= THRESH).astype(x.dtype)
        outs.append(spike)
    return jnp.stack(outs, axis=0)


if __name__ == "__main__":
    # TODO(synk): only the forward pass is implemented; ActFun's rectangular
    # surrogate gradient (backward) is not translated here.
    T, B, C, H, W = 8, 2, 4, 16, 16
    key = jax.random.PRNGKey(0)
    x = jax.random.normal(key, (T, B, C, H, W), dtype=jnp.float32)

    out = jax.block_until_ready(mem_update_pallas(x))
    ref = mem_update_ref(x)

    assert out.shape == x.shape
    assert out.dtype == x.dtype
    assert jnp.max(jnp.abs(out - ref)) == 0.0

    print("KERNEL_OK")
</pallas_src>

<mosaic_0001>
module attributes {stable_mosaic.version = 11 : i64} {
  func.func @_lif_kernel(%arg0: i32, %arg1: memref<8x8x128xf32, #tpu.memory_space<vmem>>, %arg2: memref<8x8x128xf32, #tpu.memory_space<vmem>>, %arg3: memref<8x128xf32, #tpu.memory_space<vmem>>) attributes {dimension_semantics = [#tpu.dimension_semantics<parallel>], iteration_bounds = array<i64: 2>, scalar_prefetch = 0 : i64, scratch_operands = 1 : i64, tpu.core_type = #tpu.core_type<tc>, window_params = [{transform_indices = @transform_0, window_bounds = array<i64: 8, 8, 128>}, {transform_indices = @transform_1, window_bounds = array<i64: 8, 8, 128>}]} {
    %c0 = arith.constant 0 : index
    %c0_0 = arith.constant 0 : index
    %c0_1 = arith.constant 0 : index
    %0 = vector.load %arg1[%c0, %c0_0, %c0_1] : memref<8x8x128xf32, #tpu.memory_space<vmem>>, vector<1x8x128xf32>
    %1 = vector.shape_cast %0 : vector<1x8x128xf32> to vector<8x128xf32>
    %c0_2 = arith.constant 0 : index
    %c0_3 = arith.constant 0 : index
    %2 = vector.load %arg3[%c0_2, %c0_3] : memref<8x128xf32, #tpu.memory_space<vmem>>, vector<8x128xf32>
    tpu.vector_store %arg3[%c0_2, %c0_3], %1 {strides = array<i32>} : memref<8x128xf32, #tpu.memory_space<vmem>>, vector<8x128xf32>,
    %cst = arith.constant 5.000000e-01 : f32
    %3 = vector.broadcast %cst : f32 to vector<8x128xf32>
    %4 = arith.cmpf oge, %1, %3 : vector<8x128xf32>
    %5 = arith.extui %4 : vector<8x128xi1> to vector<8x128xi32>
    %6 = arith.sitofp %5 : vector<8x128xi32> to vector<8x128xf32>
    %c0_4 = arith.constant 0 : index
    %c0_5 = arith.constant 0 : index
    %c0_6 = arith.constant 0 : index
    %7 = vector.load %arg2[%c0_4, %c0_5, %c0_6] : memref<8x8x128xf32, #tpu.memory_space<vmem>>, vector<1x8x128xf32>
    %8 = vector.shape_cast %7 : vector<1x8x128xf32> to vector<8x128xf32>
    %9 = vector.shape_cast %6 : vector<8x128xf32> to vector<1x8x128xf32>
    tpu.vector_store %arg2[%c0_4, %c0_5, %c0_6], %9 {strides = array<i32>} : memref<8x8x128xf32, #tpu.memory_space<vmem>>, vector<1x8x128xf32>,
    %c1_i32 = arith.constant 1 : i32
    %c7_i32 = arith.constant 7 : i32
    %10 = arith.addi %c1_i32, %c7_i32 : i32
    %c1_i32_7 = arith.constant 1 : i32
    scf.for %arg4 = %c1_i32 to %10 step %c1_i32_7  : i32 {
      %c0_9 = arith.constant 0 : index
      %c0_10 = arith.constant 0 : index
      %11 = vector.load %arg3[%c0_9, %c0_10] : memref<8x128xf32, #tpu.memory_space<vmem>>, vector<8x128xf32>
      %cst_11 = arith.constant 5.000000e-01 : f32
      %12 = vector.broadcast %cst_11 : f32 to vector<8x128xf32>
      %13 = arith.cmpf oge, %11, %12 : vector<8x128xf32>
      %cst_12 = arith.constant 2.500000e-01 : f32
      %14 = vector.broadcast %cst_12 : f32 to vector<8x128xf32>
      %15 = arith.mulf %11, %14 : vector<8x128xf32>
      %cst_13 = arith.constant 0.000000e+00 : f32
      %16 = vector.broadcast %cst_13 : f32 to vector<8x128xf32>
      %17 = arith.select %13, %16, %15 : vector<8x128xi1>, vector<8x128xf32>
      %18 = arith.index_cast %arg4 : i32 to index
      %c0_14 = arith.constant 0 : index
      %c0_15 = arith.constant 0 : index
      %19 = vector.load %arg1[%18, %c0_14, %c0_15] : memref<8x8x128xf32, #tpu.memory_space<vmem>>, vector<1x8x128xf32>
      %20 = vector.shape_cast %19 : vector<1x8x128xf32> to vector<8x128xf32>
      %21 = arith.addf %17, %20 : vector<8x128xf32>
      %c0_16 = arith.constant 0 : index
      %c0_17 = arith.constant 0 : index
      %22 = vector.load %arg3[%c0_16, %c0_17] : memref<8x128xf32, #tpu.memory_space<vmem>>, vector<8x128xf32>
      tpu.vector_store %arg3[%c0_16, %c0_17], %21 {strides = array<i32>} : memref<8x128xf32, #tpu.memory_space<vmem>>, vector<8x128xf32>,
      %cst_18 = arith.constant 5.000000e-01 : f32
      %23 = vector.broadcast %cst_18 : f32 to vector<8x128xf32>
      %24 = arith.cmpf oge, %21, %23 : vector<8x128xf32>
      %25 = arith.extui %24 : vector<8x128xi1> to vector<8x128xi32>
      %26 = arith.sitofp %25 : vector<8x128xi32> to vector<8x128xf32>
      %27 = arith.index_cast %arg4 : i32 to index
      %c0_19 = arith.constant 0 : index
      %c0_20 = arith.constant 0 : index
      %28 = vector.load %arg2[%27, %c0_19, %c0_20] : memref<8x8x128xf32, #tpu.memory_space<vmem>>, vector<1x8x128xf32>
      %29 = vector.shape_cast %28 : vector<1x8x128xf32> to vector<8x128xf32>
      %30 = vector.shape_cast %26 : vector<8x128xf32> to vector<1x8x128xf32>
      tpu.vector_store %arg2[%27, %c0_19, %c0_20], %30 {strides = array<i32>} : memref<8x8x128xf32, #tpu.memory_space<vmem>>, vector<1x8x128xf32>,
    }
    %c7_i32_8 = arith.constant 7 : i32
    return
  }
  func.func @transform_0(%arg0: i32) -> (i32, i32, i32) {
    %c0_i32 = arith.constant 0 : i32
    %c0_i32_0 = arith.constant 0 : i32
    %c0_i32_1 = arith.constant 0 : i32
    return %c0_i32, %arg0, %c0_i32_0 : i32, i32, i32
  }
  func.func @transform_1(%arg0: i32) -> (i32, i32, i32) {
    %c0_i32 = arith.constant 0 : i32
    %c0_i32_0 = arith.constant 0 : i32
    %c0_i32_1 = arith.constant 0 : i32
    return %c0_i32, %arg0, %c0_i32_0 : i32, i32, i32
  }
}

</mosaic_0001>

<bundles_post_ra>
// kernel: tpu_custom_call.1
= control target key start
LH: loop header
LB: loop body
LE: loop exit
PB: predicated region body
PF: predicated region fallthrough
CT: control target
= control target key end

     0   :  { %6 = vsyncpa [#allocation4], 0  ;;  %s626_s0 = inlined_call_operand.hbm [shape: f32[8,16,128], index: 0, kind: input, shape index: {}]   ;;  %s627_s1 = inlined_call_operand.hbm [shape: f32[8,16,128], index: 1, kind: output, shape index: {}]  }
   0x1   :  { %8 = vsyncpa [#allocation4 + $0x1], 0 }
   0x2   :  { %9 = vsyncpa [#allocation5], 0 }
   0x3   :  { %11 = vsyncpa [#allocation5 + $0x1], 0  ;;  %s458_s6 = smov 0   ;;  %s460_s7 = smov 0  }
   0x4   :  { %s462_s8 = smov 0   ;;  %s464_s9 = smov 0  }
   0x5 LB: > { %s479_s10 = sadd.s32 4294967295, %s432_s9   ;;  %s255_s11 = sadd.s32 4294967294, %s432_s9   ;;  %s432_s9 = sphi %s464_s9, %s641_s9   ;;  %s428_s8 = sphi %s462_s8, %s640_s8   ;;  %s424_s7 = sphi %s460_s7, %s639_s7   ;;  %s420_s6 = sphi %s458_s6, %s638_s6  }
   0x6   : > { %s483_s12 = sadd.s32 1, %s432_s9   ;;  %s24_s13 = sadd.s32 1, %s428_s8 }
   0x7   : > { %s21_s14 = ssub.s32 %s432_s9, %s483_s12  ;;  %p31_p0 = scmp.ne.s32.totalorder %s428_s8, %s424_s7 }
   0x8   : > { %p22_p1 = scmp.eq.s32.totalorder %s21_s14, 0  ;;  %p32_p2 = scmp.eq.s32.totalorder %s432_s9, 0 }
   0x9   : > { %p37_p3 = scmp.ne.s32.totalorder %s424_s7, %s420_s6  ;;  %p38_p4 = scmp.eq.s32.totalorder %s479_s10, 0 }
   0xa   : > { %s495_s15 = scalar_select %p22_p1, %s428_s8, %s24_s13  }
   0xb   : > { %p497_p5 = por %p32_p2, %p31_p0  ;;  %p501_p6 = por %p38_p4, %p37_p3 }
   0xc   : > { %p61_p7 = scmp.eq.s32.totalorder %s479_s10, 1  ;;  %p67_p8 = scmp.eq.s32.totalorder %s255_s11, 1 }
   0xd   : > { %p282_p10 = scmp.lt.s32.totalorder %s432_s9, 2  ;;  %s87_s20 = sand.u32 1, %s428_s8  }
   0xe   : > { %p508_p11 = por %p61_p7, %p31_p0  ;;  %p512_p12 = por %p67_p8, %p37_p3 }
   0xf   : > { %s259_s21 = sshll.u32 %s432_s9, 7  ;;  %s258_s22 = sshll.u32 %s87_s20, 6 }
  0x10   : > { %s631_s18 = scalar_select %p508_p11, 1, 0 }
  0x11   : > { %s632_s19 = scalar_select %p512_p12, 1, 0 }
  0x12   : > { %s521_s25 = scalar_lea.hbm %s626_s0, %s259_s21  ;;  %s91_s26 = scalar_lea.vmem [#allocation3], %s258_s22 }
  0x13   : > { %s97_s27 = sshll.u32 %s91_s26, 4  ;;  %p525_p13 = pnand %p282_p10, %p497_p5  ;;  %s529_s27 = int_to_ptr.vmem [resolvable:$true] %s97_s27 }
  0x14   : > { %s532_s29 = scalar_lea.sflag [#allocation4], %s87_s20  ;;  %s332_s30 = scalar_lea.hbm %s521_s25, 1024 }
  0x15   : > { %p333_p1 = scmp.ne.s32.totalorder %s521_s25, %s332_s30  ;;  %p334_p2 = pneg %p525_p13 }
  0x16   : > { %s337_s4 = scalar_lea.hbm %s626_s0, 2048  ;;  %p338_p5 = scmp.lt.u32.totalorder %s521_s25, %s626_s0 }
  0x17   : > { %p335_p3 = pnand %p334_p2, %p333_p1  ;;  %p339_p7 = scmp.lt.u32.totalorder %s337_s4, %s332_s30 }
  0x18   : > { %p341_p10 = scmp.lt.u32.totalorder %s332_s30, %s521_s25 }
  0x19   : > { %p336_p4 = pneg %p335_p3  ;;  %p340_p8 = por %p339_p7, %p338_p5 }
  0x1b   : > { %p342_p9 = por %p341_p10, %p340_p8 }
  0x1d   : > { %p343_p0 = pnand %p342_p9, %p336_p4 }
  0x1f   : > { %346 = shalt.err (!%p343_p0)
}
  0x20   : > { %s347_s13 = scalar_lea.vmem %s529_s27, 1024  ;;  %s438_s14 = smov [#allocation3]  }
  0x21   : > { %p348_p1 = scmp.ne.s32.totalorder %s529_s27, %s347_s13  ;;  %s352_s16 = sshll.u32 %s438_s14, 4  ;;  %s353_s16 = int_to_ptr.vmem [resolvable:$false] %s352_s16 }
  0x22   : > { %s354_s20 = scalar_lea.vmem %s353_s16, 2048  ;;  %p355_p11 = scmp.lt.s32.totalorder %s529_s27, %s353_s16 }
  0x23   : > { %p350_p3 = pnand %p348_p1, %p334_p2  ;;  %p356_p5 = scmp.lt.s32.totalorder %s354_s20, %s347_s13 }
  0x25   : > { %p351_p12 = pneg %p350_p3  ;;  %p357_p7 = por %p356_p5, %p355_p11 }
  0x27   : > { %p358_p8 = pnand %p357_p7, %p351_p12 }
  0x29   : > { %361 = shalt.err (!%p358_p8)
}
  0x2a   : > { %s439_s21 = smov 256   ;;  %s440_s22 = smov 128  }
  0x2b   : > { %s441_s23 = smov 8   ;;  %p105_p9 = scmp.lt.s32.totalorder %s432_s9, 3 }
  0x2c   : > { %277 = dma.hbm_to_vmem [thread:$0]  (!%p525_p13), %s521_s25, 1024, %s529_s27, %s532_s29, %s439_s21, %s440_s22, %s441_s23  }
  0x2d   : > { %p634_p0 = scmp.ge.s32.totalorder %s432_s9, 1 }
  0x2f   : > { %p106_p2 = pnand %p634_p0, %p105_p9 }
  0x30   : > { %s564_s24 = sand.u32 (!%p106_p2), 1, %s424_s7  }
  0x31   : > { %109 = sbr.rel (%p106_p2) target bundleno = 92 (0x5c), region = 24  ;;  %s261_s26 = sshll.u32 (!%p106_p2), %s564_s24, 6 }
  0x32   : > { %s112_s30 = scalar_lea.sflag (!%p106_p2), [#allocation4], %s564_s24  ;;  %s568_s2 = scalar_lea.vmem (!%p106_p2), [#allocation3], %s261_s26 }
  0x38   : > { %411 = dma.done.wait (%p501_p6), %s112_s30, 1024  }
  0x39   : > { %413 = vsyncadd (%p501_p6), %s112_s30, 4294966272  ;;  %v134_v0 = vld [vmem:[%s568_s2] sm:$0xff]  ;;  %v442_v1 = vmov 0.0   ;;  %s133_s25 = scalar_lea.vmem [#allocation6], %s261_s26  ;;  %s434_s27 = smov 1  }
  0x3a   : > { %135 = vst [vmem:[#allocation2] sm:$0xff] %v134_v0  ;;  %vm136_vm0 = vcmp.ge.f32.partialorder %v134_v0, 0.5 }
  0x3b   : > { %v263_v2 = vsel %vm136_vm0, 1.0, %v442_v1 }
  0x3c   : > { %139 = vst [vmem:[%s133_s25] sm:$0xff] %v263_v2 }
  0x3d LB: >> { %s264_s28 = sshll.u32 %s436_s27, 3  ;;  %v443_v8 = vmov 0.0   ;;  %s145_s27 = sadd.s32 1, %s436_s27   ;;  %s436_s27 = sphi %s434_s27, %s145_s27  }
  0x3e   : >> { %s151_s17 = scalar_lea.vmem %s568_s2, %s264_s28 [#allocation3]  ;;  %s158_s29 = scalar_lea.vmem %s133_s25, %s264_s28 [#allocation6] }
  0x3f   : >> { %v152_v6 = vld [vmem:[%s151_s17] sm:$0xff]  ;;  %p142_p6 = scmp.ge.s32.totalorder %s145_s27, 8  }
  0x40   : > { %s267_s3 = sshll.u32 (%p142_p6), %s479_s10, 7  ;;  %s173_s13 = sshll.u32 (%p142_p6), %s133_s25, 4  ;;  %s582_s13 = int_to_ptr.vmem [resolvable:$true] %s173_s13 }
  0x41   : >> { %v146_v3 = vld [vmem:[#allocation2] sm:$0xff]  ;;  %s580_s11 = scalar_lea.hbm (%p142_p6), %s627_s1, %s267_s3  ;;  %s161_s14 = scalar_lea.sflag (%p142_p6), [#allocation5], %s564_s24 }
  0x42   : >> { %vm147_vm1 = vcmp.ge.f32.partialorder %v146_v3, 0.5  ;;  %v148_v4 = vmul.f32 0.25, %v146_v3  ;;  %s362_s16 = scalar_lea.vmem (%p142_p6), %s582_s13, 1024  ;;  %p635_p12 = scmp.ne.s32.totalorder (%p142_p6), %s631_s18, 0 }
  0x43   : > { %144 = sbr.rel (!%p142_p6) target bundleno = 61 (0x3d), region = 78  ;;  %p363_p11 = scmp.ne.s32.totalorder (%p142_p6), %s582_s13, %s362_s16 }
  0x44   : >> { %v149_v5 = vsel %vm147_vm1, 0.0, %v148_v4  ;;  %s444_s20 = smov (%p142_p6), [#allocation6]  }
  0x45   : >> { %v153_v7 = vadd.f32 %v152_v6, %v149_v5  ;;  %p364_p13 = pnand (%p142_p6), %p363_p11, %p635_p12  ;;  %s366_s21 = sshll.u32 (%p142_p6), %s444_s20, 4  ;;  %s367_s21 = int_to_ptr.vmem [resolvable:$false] %s366_s21 }
  0x46   : > { %s368_s10 = scalar_lea.vmem (%p142_p6), %s367_s21, 2048  ;;  %p369_p10 = scmp.lt.s32.totalorder (%p142_p6), %s582_s13, %s367_s21 }
  0x47   : >> { %154 = vst [vmem:[#allocation2] sm:$0xff] %v153_v7  ;;  %vm155_vm2 = vcmp.ge.f32.partialorder %v153_v7, 0.5  ;;  %p365_p4 = pneg (%p142_p6), %p364_p13  ;;  %p370_p1 = scmp.lt.s32.totalorder (%p142_p6), %s368_s10, %s362_s16 }
  0x48   : >> { %v265_v9 = vsel %vm155_vm2, 1.0, %v443_v8 }
  0x49   : >> { %159 = vst [vmem:[%s158_s29] sm:$0xff] %v265_v9  ;;  %p371_p3 = por (%p142_p6), %p370_p1, %p369_p10 }
  0x4b   : > { %p372_p5 = pnand %p371_p3, %p365_p4 }
  0x4d   : > { %375 = shalt.err (!%p372_p5)
}
  0x4e   : > { %s376_s22 = scalar_lea.hbm %s580_s11, 1024  ;;  %s380_s30 = scalar_lea.hbm %s627_s1, 2048 }
  0x4f   : > { %p377_p7 = scmp.ne.s32.totalorder %s580_s11, %s376_s22  ;;  %p381_p0 = scmp.lt.u32.totalorder %s580_s11, %s627_s1 }
  0x50   : > { %p382_p2 = scmp.lt.u32.totalorder %s380_s30, %s376_s22  ;;  %p384_p11 = scmp.lt.u32.totalorder %s376_s22, %s580_s11 }
  0x51   : > { %p378_p8 = pnand %p377_p7, %p635_p12 }
  0x52   : > { %p383_p6 = por %p382_p2, %p381_p0 }
  0x53   : > { %p379_p9 = pneg %p378_p8 }
  0x54   : > { %p385_p13 = por %p384_p11, %p383_p6 }
  0x56   : > { %p386_p4 = pnand %p385_p13, %p379_p9 }
  0x58   : > { %389 = shalt.err (!%p386_p4)
}
  0x59   : > { %s445_s27 = smov 128   ;;  %s446_s28 = smov 256  }
  0x5a   : > { %s447_s17 = smov 8  }
  0x5b   : > { %272 = dma.vmem_to_hbm [thread:$0]  (%p635_p12), %s582_s13, 1024, %s580_s11, %s161_s14, %s445_s27, %s446_s28, %s447_s17  }
  0x5c PF: > { %s188_s29 = sand.u32 1, %s420_s6   ;;  %p636_p10 = scmp.ne.s32.totalorder %s632_s19, 0 }
  0x5d   : > { %p637_p1 = scmp.ge.s32.totalorder %s432_s9, 2  ;;  %s189_s3 = scalar_lea.sflag [#allocation5], %s188_s29 }
  0x5f   : > { %p279_p3 = pnand %p637_p1, %p636_p10 }
  0x61   : > { %415 = dma.done.wait (!%p279_p3), %s189_s3, 1024  }
  0x62   : > { %417 = vsyncadd (!%p279_p3), %s189_s3, 4294966272  ;;  %p14_p5 = scmp.ge.s32.totalorder %s483_s12, 4   ;;  %s638_s6 = smov %s424_s7 }
  0x63   : > { %s639_s7 = smov %s428_s8  ;;  %s640_s8 = smov %s495_s15 }
  0x64   : > { %s641_s9 = smov %s483_s12  ;;  %16 = sbr.rel (!%p14_p5) target bundleno = 5 (0x5), region = 89 }
  0x6b   :  { %194 = vsyncpa [#allocation4], 1 }
  0x6c   :  { %196 = vsyncpa [#allocation4 + $0x1], 1 }
  0x6d   :  { %197 = vsyncpa [#allocation5], 1 }
  0x6e   :  { %199 = vsyncpa [#allocation5 + $0x1], 1 }

</bundles_post_ra>
